<compile_context>
chip_gen: v7x
topology: tpu7x:2x2x1
jax: 0.10.0
libtpu: 0.0.40
codegen_flags: <defaults>
</compile_context>

<pallas_src>
import jax
import jax.numpy as jnp
from jax.experimental import pallas as pl
from jax.experimental.pallas import tpu as pltpu  # noqa: F401  (TPU backend assumed)

HIDDEN = 32
NEG_FILL = -10000.0


# ---- math shared by the kernel body and the pure-JAX reference --------------
def _sigmoid(x):
    return 1.0 / (1.0 + jnp.exp(-x))


# ---- Pallas kernel -----------------------------------------------------------
def _make_kernel(B, E, T, H):
    def kernel(tok_ref, ent_ref, mask_ref, w_ref, b_ref, wb_ref, cls_ref, p_ref):
        # Batch-folded projections: one matmul each on sublane-dense slabs.
        tok_proj = (
            jnp.dot(tok_ref[...], w_ref[0], preferred_element_type=jnp.float32)
            + b_ref[0:1, :]
        )  # (B*T, H)
        ent_proj = (
            jnp.dot(ent_ref[...], w_ref[1], preferred_element_type=jnp.float32)
            + b_ref[1:2, :]
        )  # (B*E, H)

        # Pairwise (entity, token) feature matrix, relu, contract H with the
        # boundary-predictor weight (broadcast multiply + lane reduction).
        tok4 = tok_proj.reshape(B, 1, T, H)
        ent4 = ent_proj.reshape(B, E, 1, H)
        m = jnp.maximum(tok4 + ent4, 0.0)                       # (B, E, T, H)
        wb = wb_ref[...].reshape(1, 1, 1, H)                    # (1, 1, 1, H)
        cls = jnp.sum(m * wb, axis=-1)                          # (B, E, T)

        # token_mask broadcast over the entity axis; masked positions are set
        # to exactly -10000 (matching the in-place assignment in PyTorch).
        keep = mask_ref[...][:, None, :] > 0.5                  # (B, 1, T)
        cls = jnp.where(keep, cls, NEG_FILL)

        cls_ref[...] = cls
        p_ref[...] = _sigmoid(cls)

    return kernel


def head_tail_boundary_predictor(token_embedding, entity_embedding, token_mask, params):
    """token_embedding: (B,T,H), entity_embedding: (B,E,H), token_mask: (B,T) bool."""
    B, T, H = token_embedding.shape
    _, E, _ = entity_embedding.shape

    # Pack parameters into a few stacked arrays (fewer, denser VMEM inputs).
    w_stack = jnp.stack([params["w_tok"], params["w_ent"]], axis=0)   # (2, H, H)
    b_stack = jnp.stack([params["b_tok"], params["b_ent"]], axis=0)   # (2, H)
    wb = params["w_bp"].reshape(1, H)                                 # (1, H)

    # Fold the batch onto the sublane axis for the projections.
    tok2d = token_embedding.reshape(B * T, H)
    ent2d = entity_embedding.reshape(B * E, H)
    mask_f = token_mask.astype(jnp.float32)

    # Whole problem in one kernel invocation (no grid): all inputs/outputs are
    # single full-array VMEM blocks (<100 KiB total on any TPU generation).
    cls, p = pl.pallas_call(
        _make_kernel(B, E, T, H),
        out_shape=(
            jax.ShapeDtypeStruct((B, E, T), jnp.float32),
            jax.ShapeDtypeStruct((B, E, T), jnp.float32),
        ),
    )(tok2d, ent2d, mask_f, w_stack, b_stack, wb)
    return cls, p


# ---- pure-JAX reference (mirrors the PyTorch forward) ------------------------
def reference(token_embedding, entity_embedding, token_mask, params):
    tok_p = token_embedding @ params["w_tok"] + params["b_tok"]       # (B, T, H)
    ent_p = entity_embedding @ params["w_ent"] + params["b_ent"]      # (B, E, H)
    matrix = tok_p[:, None, :, :] + ent_p[:, :, None, :]              # (B, E, T, H)
    cls = (jnp.maximum(matrix, 0.0) @ params["w_bp"])[..., 0]         # (B, E, T)
    keep = token_mask[:, None, :]                                     # (B, 1, T)
    cls = jnp.where(keep, cls, NEG_FILL)
    return cls, _sigmoid(cls)


# ---- deterministic parameter init (PyTorch-Linear-style uniform) -------------
def init_params(key):
    ks = jax.random.split(key, 5)
    bound = 1.0 / jnp.sqrt(jnp.float32(HIDDEN))
    return {
        "w_tok": jax.random.uniform(ks[0], (HIDDEN, HIDDEN), jnp.float32, -bound, bound),
        "b_tok": jax.random.uniform(ks[1], (HIDDEN,), jnp.float32, -bound, bound),
        "w_ent": jax.random.uniform(ks[2], (HIDDEN, HIDDEN), jnp.float32, -bound, bound),
        "b_ent": jax.random.uniform(ks[3], (HIDDEN,), jnp.float32, -bound, bound),
        "w_bp":  jax.random.uniform(ks[4], (HIDDEN, 1), jnp.float32, -bound, bound),
    }


if __name__ == "__main__":
    B, T, E = 2, 16, 8   # batch, token seq len, number of entities

    key = jax.random.PRNGKey(0)
    k_tok, k_ent, k_par = jax.random.split(key, 3)

    token_embedding = jax.random.normal(k_tok, (B, T, HIDDEN), jnp.float32)
    entity_embedding = jax.random.normal(k_ent, (B, E, HIDDEN), jnp.float32)
    # boolean token mask: 1 = valid token, 0 = padding
    lengths = jnp.array([T, 10], jnp.int32)
    token_mask = jnp.arange(T)[None, :] < lengths[:, None]            # (B, T) bool

    params = init_params(k_par)

    cls, p = head_tail_boundary_predictor(
        token_embedding, entity_embedding, token_mask, params)
    cls, p = jax.block_until_ready((cls, p))

    ref_cls, ref_p = reference(token_embedding, entity_embedding, token_mask, params)
    ref_cls, ref_p = jax.block_until_ready((ref_cls, ref_p))

    assert cls.shape == (B, E, T) and p.shape == (B, E, T)
    assert jnp.allclose(cls, ref_cls, atol=1e-4, rtol=1e-4), "cls mismatch vs reference"
    assert jnp.allclose(p, ref_p, atol=1e-5, rtol=1e-5), "prob mismatch vs reference"

    print("KERNEL_OK")
</pallas_src>

<mosaic_0001>
module attributes {stable_mosaic.version = 11 : i64} {
  func.func @kernel(%arg0: memref<32x32xf32, #tpu.memory_space<vmem>>, %arg1: memref<16x32xf32, #tpu.memory_space<vmem>>, %arg2: memref<2x16xf32, #tpu.memory_space<vmem>>, %arg3: memref<2x32x32xf32, #tpu.memory_space<vmem>>, %arg4: memref<2x32xf32, #tpu.memory_space<vmem>>, %arg5: memref<1x32xf32, #tpu.memory_space<vmem>>, %arg6: memref<2x8x16xf32, #tpu.memory_space<vmem>>, %arg7: memref<2x8x16xf32, #tpu.memory_space<vmem>>) attributes {dimension_semantics = [], scalar_prefetch = 0 : i64, scratch_operands = 0 : i64, tpu.core_type = #tpu.core_type<tc>} {
    %c0 = arith.constant 0 : index
    %c0_0 = arith.constant 0 : index
    %0 = vector.load %arg0[%c0, %c0_0] : memref<32x32xf32, #tpu.memory_space<vmem>>, vector<32x32xf32>
    %c0_1 = arith.constant 0 : index
    %c0_2 = arith.constant 0 : index
    %c0_3 = arith.constant 0 : index
    %1 = vector.load %arg3[%c0_1, %c0_2, %c0_3] : memref<2x32x32xf32, #tpu.memory_space<vmem>>, vector<1x32x32xf32>
    %2 = vector.shape_cast %1 : vector<1x32x32xf32> to vector<32x32xf32>
    %cst = arith.constant dense<0.000000e+00> : vector<32x32xf32>
    %3 = tpu.matmul %0, %2, %cst {dimension_numbers = #tpu.dot_dimension_numbers<[1], [0], [0], [1], [0, 0, 1, 1], [], []>} : vector<32x32xf32>, vector<32x32xf32>, vector<32x32xf32> -> vector<32x32xf32>
    %c0_4 = arith.constant 0 : index
    %c0_5 = arith.constant 0 : index
    %4 = vector.load %arg4[%c0_4, %c0_5] : memref<2x32xf32, #tpu.memory_space<vmem>>, vector<1x32xf32>
    %5 = vector.broadcast %4 : vector<1x32xf32> to vector<32x32xf32>
    %6 = arith.addf %3, %5 : vector<32x32xf32>
    %c0_6 = arith.constant 0 : index
    %c0_7 = arith.constant 0 : index
    %7 = vector.load %arg1[%c0_6, %c0_7] : memref<16x32xf32, #tpu.memory_space<vmem>>, vector<16x32xf32>
    %c1 = arith.constant 1 : index
    %c0_8 = arith.constant 0 : index
    %c0_9 = arith.constant 0 : index
    %8 = vector.load %arg3[%c1, %c0_8, %c0_9] : memref<2x32x32xf32, #tpu.memory_space<vmem>>, vector<1x32x32xf32>
    %9 = vector.shape_cast %8 : vector<1x32x32xf32> to vector<32x32xf32>
    %cst_10 = arith.constant dense<0.000000e+00> : vector<16x32xf32>
    %10 = tpu.matmul %7, %9, %cst_10 {dimension_numbers = #tpu.dot_dimension_numbers<[1], [0], [0], [1], [0, 0, 1, 1], [], []>} : vector<16x32xf32>, vector<32x32xf32>, vector<16x32xf32> -> vector<16x32xf32>
    %c1_11 = arith.constant 1 : index
    %c0_12 = arith.constant 0 : index
    %11 = vector.load %arg4[%c1_11, %c0_12] : memref<2x32xf32, #tpu.memory_space<vmem>>, vector<1x32xf32>
    %12 = vector.broadcast %11 : vector<1x32xf32> to vector<16x32xf32>
    %13 = arith.addf %10, %12 : vector<16x32xf32>
    %14 = vector.shape_cast %6 : vector<32x32xf32> to vector<2x1x16x32xf32>
    %15 = vector.shape_cast %13 : vector<16x32xf32> to vector<2x8x1x32xf32>
    %16 = vector.broadcast %14 : vector<2x1x16x32xf32> to vector<2x8x16x32xf32>
    %17 = vector.broadcast %15 : vector<2x8x1x32xf32> to vector<2x8x16x32xf32>
    %18 = arith.addf %16, %17 : vector<2x8x16x32xf32>
    %cst_13 = arith.constant 0.000000e+00 : f32
    %19 = vector.broadcast %cst_13 : f32 to vector<2x8x16x32xf32>
    %20 = arith.maximumf %18, %19 : vector<2x8x16x32xf32>
    %c0_14 = arith.constant 0 : index
    %c0_15 = arith.constant 0 : index
    %21 = vector.load %arg5[%c0_14, %c0_15] : memref<1x32xf32, #tpu.memory_space<vmem>>, vector<1x32xf32>
    %22 = vector.shape_cast %21 : vector<1x32xf32> to vector<1x1x1x32xf32>
    %23 = vector.broadcast %22 : vector<1x1x1x32xf32> to vector<2x8x16x32xf32>
    %24 = arith.mulf %20, %23 : vector<2x8x16x32xf32>
    %cst_16 = arith.constant dense<0.000000e+00> : vector<2x8x16xf32>
    %25 = vector.multi_reduction <add>, %24, %cst_16 [3] : vector<2x8x16x32xf32> to vector<2x8x16xf32>
    %c0_17 = arith.constant 0 : index
    %c0_18 = arith.constant 0 : index
    %26 = vector.load %arg2[%c0_17, %c0_18] : memref<2x16xf32, #tpu.memory_space<vmem>>, vector<2x16xf32>
    %27 = vector.shape_cast %26 : vector<2x16xf32> to vector<2x1x16xf32>
    %cst_19 = arith.constant 5.000000e-01 : f32
    %28 = vector.broadcast %cst_19 : f32 to vector<2x1x16xf32>
    %29 = arith.cmpf ogt, %27, %28 : vector<2x1x16xf32>
    %cst_20 = arith.constant -1.000000e+04 : f32
    %30 = vector.shape_cast %29 : vector<2x1x16xi1> to vector<2x1x16xi1>
    %31 = vector.broadcast %30 : vector<2x1x16xi1> to vector<2x8x16xi1>
    %32 = vector.broadcast %cst_20 : f32 to vector<2x8x16xf32>
    %33 = arith.select %31, %25, %32 : vector<2x8x16xi1>, vector<2x8x16xf32>
    %c0_21 = arith.constant 0 : index
    %c0_22 = arith.constant 0 : index
    %c0_23 = arith.constant 0 : index
    %34 = vector.load %arg6[%c0_21, %c0_22, %c0_23] : memref<2x8x16xf32, #tpu.memory_space<vmem>>, vector<2x8x16xf32>
    tpu.vector_store %arg6[%c0_21, %c0_22, %c0_23], %33 {strides = array<i32>} : memref<2x8x16xf32, #tpu.memory_space<vmem>>, vector<2x8x16xf32>,
    %cst_24 = arith.constant 0.000000e+00 : f32
    %35 = vector.broadcast %cst_24 : f32 to vector<2x8x16xf32>
    %36 = arith.subf %35, %33 : vector<2x8x16xf32>
    %37 = math.exp %36 : vector<2x8x16xf32>
    %cst_25 = arith.constant 1.000000e+00 : f32
    %38 = vector.broadcast %cst_25 : f32 to vector<2x8x16xf32>
    %39 = arith.addf %38, %37 : vector<2x8x16xf32>
    %cst_26 = arith.constant 1.000000e+00 : f32
    %40 = vector.broadcast %cst_26 : f32 to vector<2x8x16xf32>
    %41 = arith.divf %40, %39 : vector<2x8x16xf32>
    %c0_27 = arith.constant 0 : index
    %c0_28 = arith.constant 0 : index
    %c0_29 = arith.constant 0 : index
    %42 = vector.load %arg7[%c0_27, %c0_28, %c0_29] : memref<2x8x16xf32, #tpu.memory_space<vmem>>, vector<2x8x16xf32>
    tpu.vector_store %arg7[%c0_27, %c0_28, %c0_29], %41 {strides = array<i32>} : memref<2x8x16xf32, #tpu.memory_space<vmem>>, vector<2x8x16xf32>,
    return
  }
}

</mosaic_0001>

<bundles_post_ra>
// kernel: tpu_custom_call.1
= control target key start
LH: loop header
LB: loop body
LE: loop exit
PB: predicated region body
PF: predicated region fallthrough
CT: control target
= control target key end

     0   :  { %13 = vsyncpa [#allocation3], 0  ;;  %s1534_s0 = inlined_call_operand.hbm [shape: f32[32,32], index: 0, kind: input, shape index: {}]   ;;  %s1535_s1 = inlined_call_operand.hbm [shape: f32[16,32], index: 1, kind: input, shape index: {}]   ;;  %s1536_s2 = inlined_call_operand.vmem [shape: f32[2,16], index: 2, kind: input, shape index: {}]   ;;  %s1537_s3 = inlined_call_operand.hbm [shape: f32[2,32,32], index: 3, kind: input, shape index: {}]   ;;  %s1538_s4 = inlined_call_operand.vmem [shape: f32[2,32], index: 4, kind: input, shape index: {}]   ;;  %s1539_s5 = inlined_call_operand.vmem [shape: f32[1,32], index: 5, kind: input, shape index: {}]   ;;  %s1540_s6 = inlined_call_operand.hbm [shape: f32[2,8,16], index: 6, kind: output, shape index: {0}]   ;;  %s1541_s7 = inlined_call_operand.hbm [shape: f32[2,8,16], index: 7, kind: output, shape index: {1}]  }
   0x1   :  { %14 = vsyncpa [#allocation6], 0 }
   0x2   :  { %15 = vsyncpa [#allocation4], 0 }
   0x3   :  { %16 = vsyncpa [#allocation10], 0  ;;  %s1147_s24 = smov [#allocation5]   ;;  %s1148_s26 = smov [#allocation2]  }
   0x4   :  { %s34_s25 = sshll.u32 %s1147_s24, 4  ;;  %s22_s27 = sshll.u32 %s1148_s26, 4  ;;  %s35_s25 = int_to_ptr.vmem [resolvable:$true] %s34_s25  ;;  %s1196_s27 = int_to_ptr.vmem [resolvable:$true] %s22_s27 }
   0x5   :  { %s1029_s30 = scalar_lea.hbm %s1535_s1, 256 }
   0x6   :  { %p1030_p0 = scmp.ne.s32.totalorder %s1535_s1, %s1029_s30  ;;  %p1033_p1 = scmp.lt.u32.totalorder %s1029_s30, %s1535_s1 }
   0x8   :  { %p1035_p2 = pnand %p1033_p1, %p1030_p0 }
   0xa   :  { %1038 = shalt.err (!%p1035_p2)
}
   0xb   :  { %s1039_s12 = scalar_lea.vmem %s35_s25, 256  ;;  %p1044_p4 = scmp.lt.s32.totalorder %s35_s25, %s35_s25 }
   0xc   :  { %p1040_p3 = scmp.ne.s32.totalorder %s35_s25, %s1039_s12  ;;  %p1045_p5 = scmp.lt.s32.totalorder %s1039_s12, %s1039_s12 }
   0xe   :  { %p1046_p6 = por %p1045_p5, %p1044_p4 }
  0x10   :  { %p1047_p7 = pnand %p1046_p6, %p1040_p3 }
  0x12   :  { %1050 = shalt.err (!%p1047_p7)
}
  0x13   :  { %s1149_s13 = smov 128   ;;  %s1150_s14 = smov 8  }
  0x14   :  { %40 = dma.hbm_to_vmem [thread:$0]  %s1535_s1, 256, %s35_s25, [#allocation6], %s1149_s13, %s1149_s13, %s1150_s14  }
  0x15   :  { %s1051_s19 = scalar_lea.hbm %s1534_s0, 512 }
  0x16   :  { %p1052_p8 = scmp.ne.s32.totalorder %s1534_s0, %s1051_s19  ;;  %p1055_p9 = scmp.lt.u32.totalorder %s1051_s19, %s1534_s0 }
  0x18   :  { %p1057_p10 = pnand %p1055_p9, %p1052_p8 }
  0x1a   :  { %1060 = shalt.err (!%p1057_p10)
}
  0x1b   :  { %s1061_s24 = scalar_lea.vmem %s1196_s27, 512  ;;  %p1066_p12 = scmp.lt.s32.totalorder %s1196_s27, %s1196_s27 }
  0x1c   :  { %p1062_p11 = scmp.ne.s32.totalorder %s1196_s27, %s1061_s24  ;;  %p1067_p13 = scmp.lt.s32.totalorder %s1061_s24, %s1061_s24 }
  0x1e   :  { %p1068_p0 = por %p1067_p13, %p1066_p12 }
  0x20   :  { %p1069_p1 = pnand %p1068_p0, %p1062_p11 }
  0x22   :  { %1072 = shalt.err (!%p1069_p1)
}
  0x23   :  { %28 = dma.hbm_to_vmem [thread:$0]  %s1534_s0, 512, %s1196_s27, [#allocation3], %s1149_s13, %s1149_s13, %s1150_s14  }
  0x24   :  { %s1151_s26 = smov [#allocation7]   ;;  %s1073_s8 = scalar_lea.hbm %s1537_s3, 1024 }
  0x25   :  { %s48_s28 = sshll.u32 %s1151_s26, 4  ;;  %p1074_p2 = scmp.ne.s32.totalorder %s1537_s3, %s1073_s8  ;;  %s49_s28 = int_to_ptr.vmem [resolvable:$true] %s48_s28 }
  0x26   :  { %p1077_p3 = scmp.lt.u32.totalorder %s1073_s8, %s1537_s3 }
  0x28   :  { %p1079_p4 = pnand %p1077_p3, %p1074_p2 }
  0x2a   :  { %1082 = shalt.err (!%p1079_p4)
}
  0x2b   :  { %s1083_s15 = scalar_lea.vmem %s49_s28, 1024  ;;  %p1088_p6 = scmp.lt.s32.totalorder %s49_s28, %s49_s28 }
  0x2c   :  { %p1084_p5 = scmp.ne.s32.totalorder %s49_s28, %s1083_s15  ;;  %p1089_p7 = scmp.lt.s32.totalorder %s1083_s15, %s1083_s15 }
  0x2e   :  { %p1090_p8 = por %p1089_p7, %p1088_p6 }
  0x30   :  { %p1091_p9 = pnand %p1090_p8, %p1084_p5 }
  0x32   :  { %1094 = shalt.err (!%p1091_p9)
}
  0x33   :  { %54 = dma.hbm_to_vmem [thread:$0]  %s1537_s3, 1024, %s49_s28, [#allocation6], %s1149_s13, %s1149_s13, %s1150_s14  }
  0x34   :  { %1139 = dma.done.wait [#allocation3], 512  }
  0x35   :  { %1140 = vsyncadd [#allocation3], 4294966784 }
  0x36   :  { %1141 = dma.done.wait [#allocation6], 1280  }
  0x37   :  { %1142 = vsyncadd [#allocation6], 4294966016  ;;  %v72_v0 = vld [vmem:[#allocation7] sm:$0xff]  ;;  %v73_v1 = vld [vmem:[#allocation7 + $0x8] sm:$0xff]  ;;  %vm81_vm0 = vcmask 261120   ;;  %v278_v18 = vlaneseq  ;;  %vm734_vm1 = vcmask 130112  }
  0x38   :  { %v182_v2 = vld [vmem:[#allocation7 + $0x20] sm:$0xff]  ;;  %v996_v3 = vpack.c.bf16 %v73_v1, %v72_v0  ;;  %v183_v4 = vld [vmem:[#allocation7 + $0x28] sm:$0xff]  ;;  %v74_v5 = vld [vmem:[#allocation7 + $0x10] sm:$0xff]  ;;  %v1152_v24 = vmov 1966171168   ;;  %vm871_vm2 = vcmask 1041409  }
  0x39   :  { %v75_v6 = vld [vmem:[#allocation7 + $0x18] sm:$0xff]  ;;  %v1004_v7 = vpack.c.bf16 %v183_v4, %v182_v2  ;;  %v184_v9 = vld [vmem:[#allocation7 + $0x30] sm:$0xff]  ;;  %v70_v16 = vld [vmem:[#allocation2 + $0x10] sm:$0xff]  ;;  %v279_v19 = vshrl.u32 %v278_v18, 7  ;;  %v724_v20 = vand.u32 127, %v278_v18  ;;  %v276_v25 = vunpack.c.l.s4 %v1152_v24 }
  0x3a   :  { %v1000_v8 = vpack.c.bf16 %v75_v6, %v74_v5  ;;  %v185_v10 = vld [vmem:[#allocation7 + $0x38] sm:$0xff]  ;;  %v68_v11 = vld [vmem:[#allocation2] sm:$0xff]  ;;  %997 = vmatprep.subr.bf16.mxu0 %v996_v3  ;;  %v71_v17 = vld [vmem:[#allocation2 + $0x18] sm:$0xff]  ;;  %vm873_vm3 = vcmask 1042434   ;;  %vm875_vm4 = vcmask 1043459   ;;  %vm877_vm5 = vcmask 1044484  }
  0x3b   :  { %v1008_v12 = vpack.c.bf16 %v185_v10, %v184_v9  ;;  %979 = vmatprep.mubr.msk.f32.mxu0 %vm81_vm0, %v68_v11  ;;  %v179_v13 = vld [vmem:[#allocation5] sm:$0xff]  ;;  %1005 = vmatprep.subr.bf16.mxu1 %v1004_v7  ;;  %v69_v14 = vld [vmem:[#allocation2 + $0x8] sm:$0xff]  ;;  %v1254_v21 = vsub.s32 %v724_v20, %v279_v19  ;;  %v729_v22 = vadd.s32 4294967288, %v724_v20  ;;  %v277_v26 = vunpack.c.0.s8 %v276_v25 }
  0x3c   :  { %999 = vmatpush3.bf16.msra.mxu0 %v996_v3  ;;  %1007 = vmatpush3.bf16.msra.mxu1 %v1004_v7  ;;  %v180_v15 = vld [vmem:[#allocation5 + $0x8] sm:$0xff]  ;;  %v952_v27 = vld [vmem:[%s1538_s4 + $0x1] ss:$0 sm:$0xff]  ;;  %v1267_v43 = vsub.s32 0, %v279_v19  ;;  %v947_v44 = vld [vmem:[%s1538_s4] ss:$0 sm:$0xff] }
  0x3d   :  { %1001 = vmatprep.subr.bf16.mxu0 %v1000_v8  ;;  %1009 = vmatprep.subr.bf16.mxu1 %v1008_v12  ;;  %v1256_v23 = vsub.s32 %v729_v22, %v279_v19  ;;  %v1261_v29 = vsub.s32 %v277_v26, %v279_v19  ;;  %v1302_v2 = vld [vmem:[%s1539_s5] ss:$0 sm:$0xff]  ;;  %vm879_vm6 = vcmask 1045509   ;;  %vm881_vm7 = vcmask 1046534  }
  0x3e   :  { %993 = vmatprep.mubr.msk.f32.mxu1 %vm81_vm0, %v179_v13  ;;  %vm883_vm10 = vcmask 1047559   ;;  %vm896_vm12 = vcmask 130048  }
  0x40   :  { %1003 = vmatpush3.bf16.msra.mxu0 %v1000_v8  ;;  %1011 = vmatpush3.bf16.msra.mxu1 %v1008_v12 }
  0x43   :  { %980 = vmatmul.mubr.msk.f32.vlgmr.msra.gmra.mrb[0].mxu0 %vm81_vm0, %v69_v14  ;;  %994 = vmatmul.mubr.msk.f32.vlgmr.msra.gmra.mrb[0].mxu1 %vm81_vm0, %v180_v15 }
  0x44   :  { %982 = vmatprep.mubr.msk.f32.mxu0 %vm81_vm0, %v70_v16 }
  0x47   :  { %983 = vmatmul.mubr.msk.f32.gmra.mrb[2].mxu0 %vm81_vm0, %v71_v17 }
 0x116   :  { %v981_v28 = vpop.f32.mrb[0].mxu0  ;;  %v995_v30 = vpop.f32.mrb[0].mxu1 }
 0x117   :  { %v160_v31 = vpop.f32.mrb[1].mxu0  ;;  %v269_v32 = vadd.f32 %v995_v30, %v952_v27  ;;  %v263_v33 = vpop.f32.mrb[1].mxu1  ;;  %v1281_v52 = vadd.f32 %v981_v28, %v947_v44 }
 0x118   :  { %v264_v34 = vadd.f32 %v952_v27, %v263_v33  ;;  %v1283_v53 = vadd.f32 %v947_v44, %v160_v31 }
 0x119   :  { %v323_v35 = vcombine.high %v269_v32, %v269_v32  ;;  %v330_v36 = vrot.slane %v269_v32, %v1261_v29 }
 0x11a   :  { %v984_v37 = vpop.f32.mrb[2].mxu0  ;;  %v281_v38 = vrot.slane %v264_v34, %v1261_v29  ;;  %v274_v54 = vcombine.high %v264_v34, %v264_v34 }
 0x11b   :  { %v170_v39 = vpop.f32.mrb[3].mxu0  ;;  %v337_v40 = vrot.slane %v323_v35, %v1261_v29  ;;  %v338_v41 = vcombine.high %v330_v36, %v330_v36  ;;  %v346_v42 = vrot.slane %v330_v36, %v1261_v29  ;;  %v1277_v50 = vadd.f32 %v984_v37, %v947_v44 }
 0x11c   :  { %v289_v45 = vcombine.high %v281_v38, %v281_v38  ;;  %v297_v46 = vrot.slane %v281_v38, %v1261_v29  ;;  %v1279_v51 = vadd.f32 %v947_v44, %v170_v39  ;;  %v288_v1 = vrot.slane %v274_v54, %v1261_v29 }
 0x11d   :  { %v360_v47 = vrot.slane %v338_v41, %v1261_v29  ;;  %v368_v48 = vcombine.high %v346_v42, %v346_v42  ;;  %v1275_v49 = vrot.slane %v337_v40, %v1261_v29  ;;  %v407_v57 = vrot.slane %v346_v42, %v1267_v43 }
 0x11e   :  { %v375_v55 = vrot.slane %v297_v46, %v1267_v43  ;;  %v1287_v56 = vrot.slane %v289_v45, %v1261_v29  ;;  %v339_v12 = vcombine.high %v337_v40, %v337_v40  ;;  %v1313_v15 = vrot.slane %v288_v1, %v1261_v29 }
 0x11f   :  { %v411_v58 = vrot.slane %v360_v47, %v1267_v43  ;;  %v415_v60 = vrot.slane %v368_v48, %v1267_v43  ;;  %v469_v62 = vadd.f32 %v407_v57, %v1277_v50  ;;  %v468_v63 = vadd.f32 %v407_v57, %v1279_v51 }
 0x120   :  { %v452_v59 = vadd.f32 %v375_v55, %v1283_v53  ;;  %v453_v61 = vadd.f32 %v375_v55, %v1281_v52  ;;  %v423_v0 = vrot.slane %v1275_v49, %v1267_v43  ;;  %v379_v11 = vrot.slane %v1287_v56, %v1267_v43 }
 0x121   :  { %v471_v3 = vadd.f32 %v411_v58, %v1277_v50  ;;  %v473_v5 = vadd.f32 %v415_v60, %v1277_v50  ;;  %v501_v6 = vmax.f32 %v469_v62, 0.0  ;;  %v500_v7 = vmax.f32 %v468_v63, 0.0 }
 0x122   :  { %v484_v4 = vmax.f32 %v452_v59, 0.0  ;;  %v477_v8 = vadd.f32 %v423_v0, %v1277_v50  ;;  %v470_v9 = vadd.f32 %v411_v58, %v1279_v51  ;;  %v319_v16 = vcombine.high %v297_v46, %v297_v46 }
 0x123   :  { %v503_v10 = vmax.f32 %v471_v3, 0.0  ;;  %v540_v13 = vmul.f32 %v1302_v2, %v501_v6  ;;  %v539_v14 = vmul.f32 %v1302_v2, %v500_v7  ;;  %v485_v18 = vmax.f32 %v453_v61, 0.0 }
 0x124   :  { %v523_v17 = vmul.f32 %v1302_v2, %v484_v4  ;;  %v505_v24 = vmax.f32 %v473_v5, 0.0  ;;  %v370_v25 = vcombine.high %v360_v47, %v360_v47  ;;  %v454_v26 = vadd.f32 %v379_v11, %v1283_v53 }
 0x125   :  { %v606_v19 = vsel %vm81_vm0, %v540_v13, 0.0  ;;  %v603_v20 = vsel %vm81_vm0, %v539_v14, 0.0  ;;  %v542_v22 = vmul.f32 %v1302_v2, %v503_v10  ;;  %v472_v27 = vadd.f32 %v415_v60, %v1279_v51 }
 0x126   :  { %607 = vadd.xlane.f32.xlu1 %v606_v19  ;;  %604 = vadd.xlane.f32.xlu0 %v603_v20  ;;  %v1322_v28 = vrot.slane %v339_v12, %v1261_v29  ;;  %v290_v30 = vcombine.high %v288_v1, %v288_v1  ;;  %v455_v31 = vadd.f32 %v379_v11, %v1281_v52  ;;  %v509_v34 = vmax.f32 %v477_v8, 0.0 }
 0x127   :  { %v476_v32 = vadd.f32 %v423_v0, %v1279_v51  ;;  %v524_v33 = vmul.f32 %v1302_v2, %v485_v18  ;;  %v383_v35 = vrot.slane %v319_v16, %v1267_v43  ;;  %v391_v36 = vrot.slane %v1313_v15, %v1267_v43 }
 0x128   :  { %v612_v37 = vsel %vm81_vm0, %v542_v22, 0.0  ;;  %v555_v38 = vsel %vm81_vm0, %v523_v17, 0.0  ;;  %v544_v39 = vmul.f32 %v1302_v2, %v505_v24  ;;  %v502_v40 = vmax.f32 %v470_v9, 0.0 }
 0x129   :  { %v457_v41 = vadd.f32 %v383_v35, %v1281_v52  ;;  %v419_v42 = vrot.slane %v370_v25, %v1267_v43  ;;  %v369_v44 = vcombine.high %v1275_v49, %v1275_v49  ;;  %v456_v45 = vadd.f32 %v383_v35, %v1283_v53 }
 0x12a   :  { %613 = vadd.xlane.f32.xlu1 %v612_v37  ;;  %556 = vadd.xlane.f32.xlu0 %v555_v38  ;;  %v461_v46 = vadd.f32 %v391_v36, %v1281_v52  ;;  %v427_v47 = vrot.slane %v1322_v28, %v1267_v43  ;;  %v318_v48 = vrot.slane %v290_v30, %v1261_v29  ;;  %v558_v54 = vsel %vm81_vm0, %v524_v33, 0.0 }
 0x12b   :  { %v486_v55 = vmax.f32 %v454_v26, 0.0  ;;  %v460_v57 = vadd.f32 %v391_v36, %v1283_v53  ;;  %v618_v58 = vsel %vm81_vm0, %v544_v39, 0.0  ;;  %v548_v59 = vmul.f32 %v1302_v2, %v509_v34 }
 0x12c   :  { %v541_v49 = vmul.f32 %v1302_v2, %v502_v40  ;;  %v504_v60 = vmax.f32 %v472_v27, 0.0  ;;  %v321_v61 = vcombine.high %v1287_v56, %v1287_v56  ;;  %v475_v62 = vadd.f32 %v419_v42, %v1277_v50 }
 0x12d   :  { %v474_v63 = vadd.f32 %v419_v42, %v1279_v51  ;;  %v487_v0 = vmax.f32 %v455_v31, 0.0  ;;  %v508_v1 = vmax.f32 %v476_v32, 0.0  ;;  %v479_v3 = vadd.f32 %v427_v47, %v1277_v50 }
 0x12e   :  { %619 = vadd.xlane.f32.xlu1 %v618_v58  ;;  %559 = vadd.xlane.f32.xlu0 %v558_v54  ;;  %v478_v4 = vadd.f32 %v427_v47, %v1279_v51  ;;  %v525_v5 = vmul.f32 %v1302_v2, %v486_v55  ;;  %v630_v6 = vsel %vm81_vm0, %v548_v59, 0.0  ;;  %v609_v7 = vsel %vm81_vm0, %v541_v49, 0.0 }
 0x12f   :  { %v543_v56 = vmul.f32 %v1302_v2, %v504_v60  ;;  %v320_v8 = vcombine.high %v1313_v15, %v1313_v15  ;;  %v431_v9 = vrot.slane %v369_v44, %v1267_v43  ;;  %v526_v10 = vmul.f32 %v1302_v2, %v487_v0 }
 0x130   :  { %v547_v11 = vmul.f32 %v1302_v2, %v508_v1  ;;  %v387_v12 = vrot.slane %v321_v61, %v1267_v43  ;;  %v395_v13 = vrot.slane %v318_v48, %v1267_v43  ;;  %v561_v14 = vsel %vm81_vm0, %v525_v5, 0.0 }
 0x131   :  { %v489_v16 = vmax.f32 %v457_v41, 0.0  ;;  %v481_v17 = vadd.f32 %v431_v9, %v1277_v50  ;;  %v480_v18 = vadd.f32 %v431_v9, %v1279_v51  ;;  %v615_v15 = vsel %vm81_vm0, %v543_v56, 0.0 }
 0x132   :  { %631 = vadd.xlane.f32.xlu1 %v630_v6  ;;  %610 = vadd.xlane.f32.xlu0 %v609_v7  ;;  %v488_v19 = vmax.f32 %v456_v45, 0.0  ;;  %v459_v20 = vadd.f32 %v387_v12, %v1281_v52  ;;  %v458_v22 = vadd.f32 %v387_v12, %v1283_v53  ;;  %v1371_v24 = vadd.f32 %v395_v13, %v1281_v52 }
 0x133   :  { %v1374_v25 = vadd.f32 %v395_v13, %v1283_v53  ;;  %v564_v26 = vsel %vm81_vm0, %v526_v10, 0.0  ;;  %v399_v27 = vrot.slane %v320_v8, %v1267_v43  ;;  %v627_v30 = vsel %vm81_vm0, %v547_v11, 0.0 }
 0x134   :  { %v528_v31 = vmul.f32 %v1302_v2, %v489_v16  ;;  %v493_v32 = vmax.f32 %v461_v46, 0.0  ;;  %v322_v33 = vcombine.high %v318_v48, %v318_v48  ;;  %v527_v34 = vmul.f32 %v1302_v2, %v488_v19 }
 0x135   :  { %v492_v35 = vmax.f32 %v460_v57, 0.0  ;;  %v465_v36 = vadd.f32 %v399_v27, %v1281_v52  ;;  %v464_v37 = vadd.f32 %v399_v27, %v1283_v53  ;;  %v371_v41 = vcombine.high %v1322_v28, %v1322_v28 }
 0x136   :  { %562 = vadd.xlane.f32.xlu1 %v561_v14  ;;  %616 = vadd.xlane.f32.xlu0 %v615_v15  ;;  %v570_v38 = vsel %vm81_vm0, %v528_v31, 0.0  ;;  %v532_v39 = vmul.f32 %v1302_v2, %v493_v32  ;;  %v403_v40 = vrot.slane %v322_v33, %v1267_v43  ;;  %v567_v42 = vsel %vm81_vm0, %v527_v34, 0.0 }
 0x137   :  { %v531_v44 = vmul.f32 %v1302_v2, %v492_v35  ;;  %v507_v45 = vmax.f32 %v475_v62, 0.0  ;;  %v506_v46 = vmax.f32 %v474_v63, 0.0  ;;  %v435_v54 = vrot.slane %v371_v41, %v1267_v43 }
 0x138   :  { %v467_v47 = vadd.f32 %v403_v40, %v1281_v52  ;;  %v466_v48 = vadd.f32 %v403_v40, %v1283_v53  ;;  %v511_v55 = vmax.f32 %v479_v3, 0.0  ;;  %v510_v57 = vmax.f32 %v478_v4, 0.0 }
 0x139   :  { %v483_v58 = vadd.f32 %v435_v54, %v1277_v50  ;;  %v482_v28 = vadd.f32 %v435_v54, %v1279_v51  ;;  %v582_v59 = vsel %vm81_vm0, %v532_v39, 0.0  ;;  %v579_v49 = vsel %vm81_vm0, %v531_v44, 0.0 }
 0x13a   :  { %565 = vadd.xlane.f32.xlu1 %v564_v26  ;;  %628 = vadd.xlane.f32.xlu0 %v627_v30  ;;  %v546_v60 = vmul.f32 %v1302_v2, %v507_v45  ;;  %v545_v61 = vmul.f32 %v1302_v2, %v506_v46  ;;  %v550_v52 = vmul.f32 %v1302_v2, %v511_v55  ;;  %v513_v63 = vmax.f32 %v481_v17, 0.0 }
 0x13b   :  { %v549_v53 = vmul.f32 %v1302_v2, %v510_v57  ;;  %v512_v51 = vmax.f32 %v480_v18, 0.0  ;;  %v491_v5 = vmax.f32 %v459_v20, 0.0  ;;  %v490_v6 = vmax.f32 %v458_v22, 0.0 }
 0x13c   :  { %v624_v62 = vsel %vm81_vm0, %v546_v60, 0.0  ;;  %v621_v50 = vsel %vm81_vm0, %v545_v61, 0.0  ;;  %v636_v0 = vsel %vm81_vm0, %v550_v52, 0.0  ;;  %v552_v3 = vmul.f32 %v1302_v2, %v513_v63 }
 0x13d   :  { %v633_v1 = vsel %vm81_vm0, %v549_v53, 0.0  ;;  %v551_v4 = vmul.f32 %v1302_v2, %v512_v51  ;;  %v495_v7 = vmax.f32 %v1371_v24, 0.0  ;;  %v494_v56 = vmax.f32 %v1374_v25, 0.0 }
 0x13e   :  { %571 = vadd.xlane.f32.xlu1 %v570_v38  ;;  %568 = vadd.xlane.f32.xlu0 %v567_v42  ;;  %v642_v8 = vsel %vm81_vm0, %v552_v3, 0.0  ;;  %v530_v10 = vmul.f32 %v1302_v2, %v491_v5  ;;  %v529_v11 = vmul.f32 %v1302_v2, %v490_v6  ;;  %v497_v12 = vmax.f32 %v465_v36, 0.0 }
 0x13f   :  { %v639_v9 = vsel %vm81_vm0, %v551_v4, 0.0  ;;  %v496_v13 = vmax.f32 %v464_v37, 0.0  ;;  %v534_v17 = vmul.f32 %v1302_v2, %v495_v7  ;;  %v533_v18 = vmul.f32 %v1302_v2, %v494_v56 }
 0x140   :  { %v576_v14 = vsel %vm81_vm0, %v530_v10, 0.0  ;;  %v573_v16 = vsel %vm81_vm0, %v529_v11, 0.0  ;;  %v536_v15 = vmul.f32 %v1302_v2, %v497_v12  ;;  %v499_v24 = vmax.f32 %v467_v47, 0.0 }
 0x141   :  { %v535_v19 = vmul.f32 %v1302_v2, %v496_v13  ;;  %v588_v20 = vsel %vm81_vm0, %v534_v17, 0.0  ;;  %v585_v22 = vsel %vm81_vm0, %v533_v18, 0.0  ;;  %v498_v25 = vmax.f32 %v466_v48, 0.0 }
 0x142   :  { %583 = vadd.xlane.f32.xlu1 %v582_v59  ;;  %580 = vadd.xlane.f32.xlu0 %v579_v49  ;;  %v594_v26 = vsel %vm81_vm0, %v536_v15, 0.0  ;;  %v538_v30 = vmul.f32 %v1302_v2, %v499_v24  ;;  %v515_v32 = vmax.f32 %v483_v58, 0.0  ;;  %v514_v33 = vmax.f32 %v482_v28, 0.0 }
 0x143   :  { %v591_v27 = vsel %vm81_vm0, %v535_v19, 0.0  ;;  %v537_v31 = vmul.f32 %v1302_v2, %v498_v25 }
 0x144   :  { %v600_v34 = vsel %vm81_vm0, %v538_v30, 0.0  ;;  %v554_v36 = vmul.f32 %v1302_v2, %v515_v32  ;;  %v553_v37 = vmul.f32 %v1302_v2, %v514_v33 }
 0x145   :  { %v597_v35 = vsel %vm81_vm0, %v537_v31, 0.0 }
 0x146   :  { %625 = vadd.xlane.f32.xlu1 %v624_v62  ;;  %622 = vadd.xlane.f32.xlu0 %v621_v50  ;;  %v648_v38 = vsel %vm81_vm0, %v554_v36, 0.0  ;;  %v645_v39 = vsel %vm81_vm0, %v553_v37, 0.0 }
 0x14a   :  { %637 = vadd.xlane.f32.xlu1 %v636_v0  ;;  %634 = vadd.xlane.f32.xlu0 %v633_v1 }
 0x14e   :  { %643 = vadd.xlane.f32.xlu1 %v642_v8  ;;  %640 = vadd.xlane.f32.xlu0 %v639_v9 }
 0x152   :  { %577 = vadd.xlane.f32.xlu1 %v576_v14  ;;  %574 = vadd.xlane.f32.xlu0 %v573_v16 }
 0x156   :  { %589 = vadd.xlane.f32.xlu1 %v588_v20  ;;  %586 = vadd.xlane.f32.xlu0 %v585_v22 }
 0x15a   :  { %595 = vadd.xlane.f32.xlu1 %v594_v26  ;;  %592 = vadd.xlane.f32.xlu0 %v591_v27 }
 0x15e   :  { %601 = vadd.xlane.f32.xlu1 %v600_v34  ;;  %598 = vadd.xlane.f32.xlu0 %v597_v35 }
 0x162   :  { %649 = vadd.xlane.f32.xlu1 %v648_v38  ;;  %646 = vadd.xlane.f32.xlu0 %v645_v39 }
 0x1b3   :  { %v608_v40 = vpop.xlane.xlu1 %607  ;;  %v605_v41 = vpop.xlane.xlu0 %604 }
 0x1b4   :  { %v806_v42 = vrot.slane %v608_v40, %v1256_v23  ;;  %v802_v44 = vrot.slane %v605_v41, %v1254_v21  ;;  %v956_v41 = vld.sshfl [vmem:[%s1536_s2] sm:$0x11 pattern:$0x75316420]  ;;  %s1154_s2 = smov [#allocation8]  }
 0x1b5   :  { %s918_s21 = sshll.u32 %s1154_s2, 4  ;;  %s919_s21 = int_to_ptr.vmem [resolvable:$true] %s918_s21 }
 0x1b6   :  { %v807_v45 = vsel %vm734_vm1, %v806_v42, %v802_v44  ;;  %s1095_s22 = scalar_lea.vmem %s919_s21, 256  ;;  %p1100_p11 = scmp.lt.s32.totalorder %s919_s21, %s919_s21 }
 0x1b7   :  { %v614_v46 = vpop.xlane.xlu1 %613  ;;  %v557_v47 = vpop.xlane.xlu0 %556  ;;  %p1096_p10 = scmp.ne.s32.totalorder %s919_s21, %s1095_s22  ;;  %p1101_p12 = scmp.lt.s32.totalorder %s1095_s22, %s1095_s22 }
 0x1b8   :  { %v728_v54 = vrot.slane %v557_v47, %v1254_v21  ;;  %v815_v59 = vrot.slane %v614_v46, %v1256_v23  ;;  %v660_v47 = vcombine.high %v956_v41, %v956_v41 }
 0x1b9   :  { %p1102_p13 = por %p1101_p12, %p1100_p11 }
 0x1bb   :  { %v620_v2 = vpop.xlane.xlu1 %619  ;;  %v560_v48 = vpop.xlane.xlu0 %559  ;;  %p1103_p0 = pnand %p1102_p13, %p1096_p10 }
 0x1bc   :  { %v733_v55 = vrot.slane %v560_v48, %v1256_v23  ;;  %v824_v62 = vrot.slane %v620_v2, %v1256_v23  ;;  %v667_v2 = vrot.slane %v956_v41, %v1261_v29 }
 0x1be   :  { %v735_v57 = vsel %vm734_vm1, %v733_v55, %v728_v54  ;;  %vm677_vm8 = vcmp.gt.f32.partialorder %v667_v2, 0.5 }
 0x1bf   :  { %v632_v58 = vpop.xlane.xlu1 %631  ;;  %v611_v28 = vpop.xlane.xlu0 %610 }
 0x1c0   :  { %v811_v49 = vrot.slane %v611_v28, %v1254_v21  ;;  %v842_v3 = vrot.slane %v632_v58, %v1256_v23 }
 0x1c2   :  { %v816_v60 = vsel %vm734_vm1, %v815_v59, %v811_v49  ;;  %v674_v59 = vrot.slane %v660_v47, %v1261_v29 }
 0x1c3   :  { %v885_v61 = vsel %vm871_vm2, %v816_v60, %v807_v45  ;;  %v563_v52 = vpop.xlane.xlu1 %562  ;;  %v617_v53 = vpop.xlane.xlu0 %616 }
 0x1c4   :  { %v820_v50 = vrot.slane %v617_v53, %v1254_v21  ;;  %v739_v4 = vrot.slane %v563_v52, %v1254_v21  ;;  %v1153_v53 = vmov 0   ;;  %vm678_vm9 = vcmp.gt.f32.partialorder %v674_v59, 0.5 }
 0x1c6   :  { %v825_v63 = vsel %vm734_vm1, %v824_v62, %v820_v50  ;;  %v679_v62 = vsel %vm677_vm8, 1, %v1153_v53 }
 0x1c7   :  { %v886_v51 = vsel %vm873_vm3, %v825_v63, %v885_v61  ;;  %v566_v0 = vpop.xlane.xlu1 %565  ;;  %v629_v1 = vpop.xlane.xlu0 %628 }
 0x1c8   :  { %v743_v5 = vrot.slane %v566_v0, %v1256_v23  ;;  %v838_v6 = vrot.slane %v629_v1, %v1254_v21  ;;  %v684_v1 = vrot.slane %v679_v62, %v1267_v43 }
 0x1ca   :  { %v744_v7 = vsel %vm734_vm1, %v743_v5, %v739_v4  ;;  %v843_v56 = vsel %vm734_vm1, %v842_v3, %v838_v6  ;;  %v680_v4 = vsel %vm678_vm9, 1, %v1153_v53  ;;  %vm689_vm11 = vcmp.eq.s32.totalorder %v684_v1, 1 }
 0x1cb   :  { %v872_v8 = vsel %vm871_vm2, %v744_v7, %v735_v57  ;;  %v572_v9 = vpop.xlane.xlu1 %571  ;;  %v569_v10 = vpop.xlane.xlu0 %568 }
 0x1cc   :  { %v752_v11 = vrot.slane %v572_v9, %v1256_v23  ;;  %v748_v12 = vrot.slane %v569_v10, %v1254_v21  ;;  %v688_v9 = vrot.slane %v680_v4, %v1267_v43 }
 0x1ce   :  { %v753_v13 = vsel %vm734_vm1, %v752_v11, %v748_v12  ;;  %vm690_vm13 = vcmp.eq.s32.totalorder %v688_v9, 1 }
 0x1cf   :  { %v874_v14 = vsel %vm873_vm3, %v753_v13, %v872_v8  ;;  %v584_v16 = vpop.xlane.xlu1 %583  ;;  %v581_v17 = vpop.xlane.xlu0 %580 }
 0x1d0   :  { %v770_v18 = vrot.slane %v584_v16, %v1256_v23  ;;  %v766_v15 = vrot.slane %v581_v17, %v1254_v21 }
 0x1d2   :  { %v771_v19 = vsel %vm734_vm1, %v770_v18, %v766_v15 }
 0x1d3   :  { %v626_v20 = vpop.xlane.xlu1 %625  ;;  %v623_v22 = vpop.xlane.xlu0 %622 }
 0x1d4   :  { %v833_v24 = vrot.slane %v626_v20, %v1256_v23  ;;  %v829_v25 = vrot.slane %v623_v22, %v1254_v21 }
 0x1d6   :  { %v834_v26 = vsel %vm734_vm1, %v833_v24, %v829_v25 }
 0x1d7   :  { %v887_v27 = vsel %vm875_vm4, %v834_v26, %v886_v51  ;;  %v638_v30 = vpop.xlane.xlu1 %637  ;;  %v635_v31 = vpop.xlane.xlu0 %634 }
 0x1d8   :  { %v851_v32 = vrot.slane %v638_v30, %v1256_v23  ;;  %v888_v33 = vsel %vm877_vm5, %v843_v56, %v887_v27  ;;  %v847_v34 = vrot.slane %v635_v31, %v1254_v21 }
 0x1da   :  { %v852_v35 = vsel %vm734_vm1, %v851_v32, %v847_v34 }
 0x1db   :  { %v889_v36 = vsel %vm879_vm6, %v852_v35, %v888_v33  ;;  %v644_v37 = vpop.xlane.xlu1 %643  ;;  %v641_v38 = vpop.xlane.xlu0 %640 }
 0x1dc   :  { %v860_v39 = vrot.slane %v644_v37, %v1256_v23  ;;  %v856_v40 = vrot.slane %v641_v38, %v1254_v21 }
 0x1de   :  { %v861_v42 = vsel %vm734_vm1, %v860_v39, %v856_v40 }
 0x1df   :  { %v890_v44 = vsel %vm881_vm7, %v861_v42, %v889_v36  ;;  %v578_v45 = vpop.xlane.xlu1 %577  ;;  %v575_v46 = vpop.xlane.xlu0 %574 }
 0x1e0   :  { %v761_v48 = vrot.slane %v578_v45, %v1256_v23  ;;  %v757_v54 = vrot.slane %v575_v46, %v1254_v21 }
 0x1e2   :  { %v762_v55 = vsel %vm734_vm1, %v761_v48, %v757_v54 }
 0x1e3   :  { %v876_v57 = vsel %vm875_vm4, %v762_v55, %v874_v14  ;;  %v590_v58 = vpop.xlane.xlu1 %589  ;;  %v587_v28 = vpop.xlane.xlu0 %586 }
 0x1e4   :  { %v779_v49 = vrot.slane %v590_v58, %v1256_v23  ;;  %v878_v60 = vsel %vm877_vm5, %v771_v19, %v876_v57  ;;  %v775_v61 = vrot.slane %v587_v28, %v1254_v21 }
 0x1e6   :  { %v780_v52 = vsel %vm734_vm1, %v779_v49, %v775_v61 }
 0x1e7   :  { %v880_v50 = vsel %vm879_vm6, %v780_v52, %v878_v60  ;;  %v596_v63 = vpop.xlane.xlu1 %595  ;;  %v593_v51 = vpop.xlane.xlu0 %592 }
 0x1e8   :  { %v788_v0 = vrot.slane %v596_v63, %v1256_v23  ;;  %v784_v29 = vrot.slane %v593_v51, %v1254_v21 }
 0x1ea   :  { %v789_v3 = vsel %vm734_vm1, %v788_v0, %v784_v29 }
 0x1eb   :  { %v882_v5 = vsel %vm881_vm7, %v789_v3, %v880_v50  ;;  %v602_v6 = vpop.xlane.xlu1 %601  ;;  %v599_v7 = vpop.xlane.xlu0 %598 }
 0x1ec   :  { %v797_v56 = vrot.slane %v602_v6, %v1256_v23  ;;  %v793_v8 = vrot.slane %v599_v7, %v1254_v21 }
 0x1ee   :  { %v798_v10 = vsel %vm734_vm1, %v797_v56, %v793_v8 }
 0x1ef   :  { %v650_v11 = vpop.xlane.xlu1 %649  ;;  %v647_v12 = vpop.xlane.xlu0 %646  ;;  %v884_v13 = vsel %vm883_vm10, %v798_v10, %v882_v5 }
 0x1f0   :  { %v869_v14 = vrot.slane %v650_v11, %v1256_v23  ;;  %v865_v16 = vrot.slane %v647_v12, %v1254_v21  ;;  %v894_v17 = vsel %vm689_vm11, %v884_v13, -10000.0 }
 0x1f1   :  { %897 = vst.msk [vmem:[#allocation8] sm:$0xff] %vm896_vm12, %v894_v17  ;;  %v899_v18 = vsub.f32 0.0, %v894_v17 }
 0x1f2   :  { %v870_v43 = vsel %vm734_vm1, %v869_v14, %v865_v16 }
 0x1f3   :  { %v891_v15 = vsel %vm883_vm10, %v870_v43, %v890_v44  ;;  %v901_v19 = vmul.f32 1.442695, %v899_v18 }
 0x1f4   :  { %v895_v20 = vsel %vm690_vm13, %v891_v15, -10000.0 }
 0x1f5   :  { %898 = vst.msk [vmem:[#allocation8 + $0x8] sm:$0xff] %vm896_vm12, %v895_v20  ;;  %v900_v22 = vsub.f32 0.0, %v895_v20  ;;  %1021 = vpow2.f32 %v901_v19 }
 0x1f6   :  { %1106 = shalt.err (!%p1103_p0)
}
 0x1f7   :  { %s1107_s1 = scalar_lea.hbm %s1540_s6, 256 }
 0x1f8   :  { %p1108_p1 = scmp.ne.s32.totalorder %s1540_s6, %s1107_s1  ;;  %p1111_p2 = scmp.lt.u32.totalorder %s1107_s1, %s1540_s6 }
 0x1fa   :  { %p1113_p3 = pnand %p1111_p2, %p1108_p1 }
 0x1fc   :  { %1116 = shalt.err (!%p1113_p3)
}
 0x1fd   :  { %924 = dma.vmem_to_hbm [thread:$0]  %s919_s21, 256, %s1540_s6, [#allocation4], %s1149_s13, %s1149_s13, %s1150_s14   ;;  %v903_v21 = vmul.f32 1.442695, %v900_v22 }
 0x1fe   :  { %s1155_s9 = smov [#allocation9]  }
 0x1ff   :  { %1023 = vpow2.f32 %v903_v21  ;;  %v1022_v23 = vpop.eup %1021  ;;  %s930_s10 = sshll.u32 %s1155_s9, 4  ;;  %s931_s10 = int_to_ptr.vmem [resolvable:$true] %s930_s10 }
 0x200   :  { %v905_v24 = vadd.f32 1.0, %v1022_v23  ;;  %s1117_s11 = scalar_lea.vmem %s931_s10, 256  ;;  %p1122_p5 = scmp.lt.s32.totalorder %s931_s10, %s931_s10 }
 0x201   :  { %p1118_p4 = scmp.ne.s32.totalorder %s931_s10, %s1117_s11  ;;  %p1123_p6 = scmp.lt.s32.totalorder %s1117_s11, %s1117_s11 }
 0x202   :  { %1025 = vrcp.f32 %v905_v24 }
 0x203   :  { %p1124_p7 = por %p1123_p6, %p1122_p5 }
 0x205   :  { %p1125_p8 = pnand %p1124_p7, %p1118_p4 }
 0x209   :  { %v1024_v25 = vpop.eup %1023 }
 0x20a   :  { %v906_v26 = vadd.f32 1.0, %v1024_v25 }
 0x20c   :  { %1027 = vrcp.f32 %v906_v26  ;;  %v1026_v27 = vpop.eup %1025 }
 0x20d   :  { %911 = vst.msk [vmem:[#allocation9] sm:$0xff] %vm896_vm12, %v1026_v27 }
 0x216   :  { %v1028_v30 = vpop.eup %1027 }
 0x217   :  { %912 = vst.msk [vmem:[#allocation9 + $0x8] sm:$0xff] %vm896_vm12, %v1028_v30 }
 0x218   :  { %1128 = shalt.err (!%p1125_p8)
}
 0x219   :  { %s1129_s15 = scalar_lea.hbm %s1541_s7, 256 }
 0x21a   :  { %p1130_p9 = scmp.ne.s32.totalorder %s1541_s7, %s1129_s15  ;;  %p1133_p10 = scmp.lt.u32.totalorder %s1129_s15, %s1541_s7 }
 0x21c   :  { %p1135_p11 = pnand %p1133_p10, %p1130_p9 }
 0x21e   :  { %1138 = shalt.err (!%p1135_p11)
}
 0x21f   :  { %936 = dma.vmem_to_hbm [thread:$0]  %s931_s10, 256, %s1541_s7, [#allocation10], %s1149_s13, %s1149_s13, %s1150_s14  }
 0x220   :  { %1143 = dma.done.wait [#allocation4], 256  }
 0x221   :  { %1144 = vsyncadd [#allocation4], 4294967040 }
 0x222   :  { %1145 = dma.done.wait [#allocation10], 256  }
 0x223   :  { %1146 = vsyncadd [#allocation10], 4294967040 }
 0x224   :  { %943 = vsyncpa [#allocation3], 1 }
 0x225   :  { %944 = vsyncpa [#allocation6], 1 }
 0x226   :  { %945 = vsyncpa [#allocation4], 1 }
 0x227   :  { %946 = vsyncpa [#allocation10], 1 }

</bundles_post_ra>
